<compile_context>
chip_gen: v5e
topology: v5e:2x2
jax: 0.10.0
libtpu: 0.0.40
codegen_flags: <defaults>
</compile_context>

<pallas_src>
import jax
import jax.numpy as jnp
from jax import lax
from jax.experimental import pallas as pl
from jax.experimental.pallas import tpu as pltpu


def _linear_kernel(x_ref, w_ref, b_ref, o_ref):
    x = x_ref[...]            # [B, IN]
    w = w_ref[...]            # [OUT_PAD, IN]  (PyTorch layout, zero-padded rows)
    b = b_ref[...]            # [1, OUT_PAD]
    # Contract over IN (dim 1 of both operands): x @ w.T on the MXU, f32 accumulate.
    acc = lax.dot_general(
        x, w,
        dimension_numbers=(((1,), (1,)), ((), ())),
        preferred_element_type=jnp.float32,
    )                         # [B, OUT_PAD]
    o_ref[...] = (acc + b).astype(o_ref.dtype)


def classifier_forward(x, weight, bias):
    """x: [B, IN]; weight: [OUT, IN] (PyTorch layout); bias: [OUT]."""
    B, IN = x.shape
    OUT = weight.shape[0]

    # Lane-dense output: pad OUT up to a multiple of 128 with zero rows/entries.
    OUT_PAD = ((OUT + 127) // 128) * 128
    if OUT_PAD != OUT:
        w_in = jnp.zeros((OUT_PAD, IN), weight.dtype).at[:OUT, :].set(weight)
        b_in = jnp.zeros((1, OUT_PAD), bias.dtype).at[0, :OUT].set(bias)
    else:
        w_in = weight
        b_in = bias.reshape(1, OUT)

    y_pad = pl.pallas_call(
        _linear_kernel,
        out_shape=jax.ShapeDtypeStruct((B, OUT_PAD), x.dtype),
        in_specs=[
            pl.BlockSpec(memory_space=pltpu.MemorySpace.VMEM),  # x
            pl.BlockSpec(memory_space=pltpu.MemorySpace.VMEM),  # weight (padded)
            pl.BlockSpec(memory_space=pltpu.MemorySpace.VMEM),  # bias   (padded)
        ],
        out_specs=pl.BlockSpec(memory_space=pltpu.MemorySpace.VMEM),
    )(x, w_in, b_in)

    return y_pad[:, :OUT] if OUT_PAD != OUT else y_pad


if __name__ == "__main__":
    # Module defaults: input_size=1024, output_size=2. Small batch.
    batch, input_size, output_size = 8, 1024, 2

    key = jax.random.PRNGKey(0)
    kx, kw, kb = jax.random.split(key, 3)

    # Deterministic init (mimics PyTorch Linear uniform(-1/sqrt(in), 1/sqrt(in)))
    bound = 1.0 / (input_size ** 0.5)
    weight = jax.random.uniform(kw, (output_size, input_size), jnp.float32,
                                minval=-bound, maxval=bound)
    bias = jax.random.uniform(kb, (output_size,), jnp.float32,
                              minval=-bound, maxval=bound)
    x = jax.random.normal(kx, (batch, input_size), jnp.float32)

    y = classifier_forward(x, weight, bias)
    jax.block_until_ready(y)

    # Cross-check against plain-JAX reference.
    y_ref = x @ weight.T + bias
    assert y.shape == (batch, output_size)
    assert jnp.allclose(y, y_ref, atol=1e-4, rtol=1e-4), "mismatch vs reference"

    print("KERNEL_OK")
</pallas_src>

<mosaic_0001>
module attributes {stable_mosaic.version = 11 : i64} {
  func.func @_linear_kernel(%arg0: memref<8x1024xf32, #tpu.memory_space<vmem>>, %arg1: memref<128x1024xf32, #tpu.memory_space<vmem>>, %arg2: memref<1x128xf32, #tpu.memory_space<vmem>>, %arg3: memref<8x128xf32, #tpu.memory_space<vmem>>) attributes {dimension_semantics = [], scalar_prefetch = 0 : i64, scratch_operands = 0 : i64, tpu.core_type = #tpu.core_type<tc>} {
    %c0 = arith.constant 0 : index
    %c0_0 = arith.constant 0 : index
    %0 = vector.load %arg0[%c0, %c0_0] : memref<8x1024xf32, #tpu.memory_space<vmem>>, vector<8x1024xf32>
    %c0_1 = arith.constant 0 : index
    %c0_2 = arith.constant 0 : index
    %1 = vector.load %arg1[%c0_1, %c0_2] : memref<128x1024xf32, #tpu.memory_space<vmem>>, vector<128x1024xf32>
    %c0_3 = arith.constant 0 : index
    %c0_4 = arith.constant 0 : index
    %2 = vector.load %arg2[%c0_3, %c0_4] : memref<1x128xf32, #tpu.memory_space<vmem>>, vector<1x128xf32>
    %cst = arith.constant dense<0.000000e+00> : vector<8x128xf32>
    %3 = tpu.matmul %0, %1, %cst {dimension_numbers = #tpu.dot_dimension_numbers<[1], [1], [0], [0], [0, 0, 1, 0], [], []>} : vector<8x1024xf32>, vector<128x1024xf32>, vector<8x128xf32> -> vector<8x128xf32>
    %4 = vector.broadcast %2 : vector<1x128xf32> to vector<8x128xf32>
    %5 = arith.addf %3, %4 : vector<8x128xf32>
    %c0_5 = arith.constant 0 : index
    %c0_6 = arith.constant 0 : index
    %6 = vector.load %arg3[%c0_5, %c0_6] : memref<8x128xf32, #tpu.memory_space<vmem>>, vector<8x128xf32>
    tpu.vector_store %arg3[%c0_5, %c0_6], %5 {strides = array<i32>} : memref<8x128xf32, #tpu.memory_space<vmem>>, vector<8x128xf32>,
    return
  }
}

</mosaic_0001>

<bundles_post_ra>
// kernel: tpu_custom_call.1
= control target key start
LH: loop header
LB: loop body
LE: loop exit
PB: predicated region body
PF: predicated region fallthrough
CT: control target
= control target key end

     0   :  { %8 = vsyncpa [#allocation3], 0  ;;  %s485_s0 = inlined_call_operand.hbm [shape: f32[8,1024], index: 0, kind: input, shape index: {}]   ;;  %s486_s1 = inlined_call_operand.hbm [shape: f32[128,1024], index: 1, kind: input, shape index: {}]   ;;  %s487_s2 = inlined_call_operand.vmem [shape: f32[1,128], index: 2, kind: input, shape index: {}]   ;;  %s488_s3 = inlined_call_operand.hbm [shape: f32[8,128], index: 3, kind: output, shape index: {}]  }
   0x1   :  { %9 = vsyncpa [#allocation6], 0 }
   0x2   :  { %10 = vsyncpa [#allocation4], 0  ;;  %s16_s14 = sshll.u32 %s485_s0, 4  ;;  %s448_s15 = smov [#allocation2]   ;;  %s17_s14 = int_to_ptr.hbm [resolvable:$true] %s16_s14 }
   0x3   :  { %s18_s16 = sshll.u32 %s448_s15, 4  ;;  %s26_s19 = sshll.u32 %s486_s1, 4  ;;  %s19_s16 = int_to_ptr.vmem [resolvable:$true] %s18_s16  ;;  %s27_s19 = int_to_ptr.hbm [resolvable:$true] %s26_s19 }
   0x4   :  { %21 = dma.hbm_to_vmem [thread:$0]  %s17_s14, 1024, %s19_s16, [#allocation3]  }
   0x5   :  { %s449_s20 = smov [#allocation5]   ;;  %s450_s22 = smov 1024  }
   0x6   :  { %s28_s21 = sshll.u32 %s449_s20, 4  ;;  %s451_s23 = smov 64   ;;  %s29_s21 = int_to_ptr.vmem [resolvable:$true] %s28_s21 }
   0x7   :  { %34 = dma.hbm_to_vmem [thread:$0]  %s27_s19, 16384, %s29_s21, [#allocation6], %s450_s22, %s450_s22, %s451_s23  }
   0x8   :  { %442 = dma.done.wait [#allocation3], 1024  }
   0x9   :  { %443 = vsyncadd [#allocation3], 4294966272 }
   0xa   :  { %444 = dma.done.wait [#allocation6], 16384  }
   0xb   :  { %445 = vsyncadd [#allocation6], 4294950912  ;;  %v175_v0 = vld [vmem:[#allocation5 + $0x3d0] sm:$0xff]  ;;  %v173_v1 = vld [vmem:[#allocation5 + $0x3c0] sm:$0xff]  ;;  %s452_s24 = smov [#allocation7]   ;;  %s353_s28 = sshll.u32 %s488_s3, 4  ;;  %s354_s28 = int_to_ptr.hbm [resolvable:$true] %s353_s28 }
   0xc   :  { %v176_v2 = vld [vmem:[#allocation5 + $0x3d8] sm:$0xff]  ;;  %225 = vmatpush.xpose.msra.mxu2 %v175_v0  ;;  %185 = vmatpush.xpose.msra.mxu0 %v173_v1  ;;  %v174_v3 = vld [vmem:[#allocation5 + $0x3c8] sm:$0xff]  ;;  %v167_v4 = vld [vmem:[#allocation5 + $0x390] sm:$0xff]  ;;  %s351_s25 = sshll.u32 %s452_s24, 4  ;;  %s352_s25 = int_to_ptr.vmem [resolvable:$true] %s351_s25 }
   0xd   :  { %245 = vmatpush.xpose.msra.mxu3 %v176_v2  ;;  %205 = vmatpush.xpose.msra.mxu1 %v174_v3  ;;  %v165_v5 = vld [vmem:[#allocation5 + $0x380] sm:$0xff]  ;;  %v168_v6 = vld [vmem:[#allocation5 + $0x398] sm:$0xff]  ;;  %v166_v7 = vld [vmem:[#allocation5 + $0x388] sm:$0xff] }
   0xe   :  { %v159_v8 = vld [vmem:[#allocation5 + $0x350] sm:$0xff]  ;;  %v157_v9 = vld [vmem:[#allocation5 + $0x340] sm:$0xff]  ;;  %v160_v10 = vld [vmem:[#allocation5 + $0x358] sm:$0xff] }
   0xf   :  { %v158_v11 = vld [vmem:[#allocation5 + $0x348] sm:$0xff]  ;;  %v151_v12 = vld [vmem:[#allocation5 + $0x310] sm:$0xff]  ;;  %v149_v13 = vld [vmem:[#allocation5 + $0x300] sm:$0xff] }
  0x10   :  { %226 = vmatpush.xpose.msra.mxu2 %v167_v4  ;;  %186 = vmatpush.xpose.msra.mxu0 %v165_v5  ;;  %v152_v14 = vld [vmem:[#allocation5 + $0x318] sm:$0xff]  ;;  %v150_v15 = vld [vmem:[#allocation5 + $0x308] sm:$0xff]  ;;  %v143_v16 = vld [vmem:[#allocation5 + $0x2d0] sm:$0xff] }
  0x11   :  { %246 = vmatpush.xpose.msra.mxu3 %v168_v6  ;;  %206 = vmatpush.xpose.msra.mxu1 %v166_v7  ;;  %v141_v17 = vld [vmem:[#allocation5 + $0x2c0] sm:$0xff]  ;;  %v144_v18 = vld [vmem:[#allocation5 + $0x2d8] sm:$0xff]  ;;  %v142_v19 = vld [vmem:[#allocation5 + $0x2c8] sm:$0xff] }
  0x12   :  { %v135_v20 = vld [vmem:[#allocation5 + $0x290] sm:$0xff]  ;;  %v133_v21 = vld [vmem:[#allocation5 + $0x280] sm:$0xff]  ;;  %v136_v22 = vld [vmem:[#allocation5 + $0x298] sm:$0xff] }
  0x13   :  { %v134_v23 = vld [vmem:[#allocation5 + $0x288] sm:$0xff]  ;;  %v127_v24 = vld [vmem:[#allocation5 + $0x250] sm:$0xff]  ;;  %v125_v25 = vld [vmem:[#allocation5 + $0x240] sm:$0xff] }
  0x14   :  { %227 = vmatpush.xpose.msra.mxu2 %v159_v8  ;;  %187 = vmatpush.xpose.msra.mxu0 %v157_v9  ;;  %v128_v26 = vld [vmem:[#allocation5 + $0x258] sm:$0xff]  ;;  %v126_v27 = vld [vmem:[#allocation5 + $0x248] sm:$0xff]  ;;  %v119_v28 = vld [vmem:[#allocation5 + $0x210] sm:$0xff] }
  0x15   :  { %247 = vmatpush.xpose.msra.mxu3 %v160_v10  ;;  %207 = vmatpush.xpose.msra.mxu1 %v158_v11  ;;  %v117_v29 = vld [vmem:[#allocation5 + $0x200] sm:$0xff]  ;;  %v120_v30 = vld [vmem:[#allocation5 + $0x218] sm:$0xff]  ;;  %v118_v31 = vld [vmem:[#allocation5 + $0x208] sm:$0xff] }
  0x16   :  { %v111_v32 = vld [vmem:[#allocation5 + $0x1d0] sm:$0xff]  ;;  %v109_v33 = vld [vmem:[#allocation5 + $0x1c0] sm:$0xff]  ;;  %v112_v34 = vld [vmem:[#allocation5 + $0x1d8] sm:$0xff] }
  0x17   :  { %v110_v35 = vld [vmem:[#allocation5 + $0x1c8] sm:$0xff]  ;;  %v103_v36 = vld [vmem:[#allocation5 + $0x190] sm:$0xff]  ;;  %v101_v37 = vld [vmem:[#allocation5 + $0x180] sm:$0xff] }
  0x18   :  { %228 = vmatpush.xpose.msra.mxu2 %v151_v12  ;;  %188 = vmatpush.xpose.msra.mxu0 %v149_v13  ;;  %v104_v38 = vld [vmem:[#allocation5 + $0x198] sm:$0xff]  ;;  %v102_v39 = vld [vmem:[#allocation5 + $0x188] sm:$0xff]  ;;  %v95_v40 = vld [vmem:[#allocation5 + $0x150] sm:$0xff] }
  0x19   :  { %248 = vmatpush.xpose.msra.mxu3 %v152_v14  ;;  %208 = vmatpush.xpose.msra.mxu1 %v150_v15  ;;  %v93_v41 = vld [vmem:[#allocation5 + $0x140] sm:$0xff]  ;;  %v96_v42 = vld [vmem:[#allocation5 + $0x158] sm:$0xff]  ;;  %v94_v43 = vld [vmem:[#allocation5 + $0x148] sm:$0xff] }
  0x1a   :  { %v87_v44 = vld [vmem:[#allocation5 + $0x110] sm:$0xff]  ;;  %v85_v45 = vld [vmem:[#allocation5 + $0x100] sm:$0xff]  ;;  %v88_v46 = vld [vmem:[#allocation5 + $0x118] sm:$0xff] }
  0x1b   :  { %v86_v47 = vld [vmem:[#allocation5 + $0x108] sm:$0xff]  ;;  %v79_v48 = vld [vmem:[#allocation5 + $0xd0] sm:$0xff]  ;;  %v77_v49 = vld [vmem:[#allocation5 + $0xc0] sm:$0xff] }
  0x1c   :  { %229 = vmatpush.xpose.msra.mxu2 %v143_v16  ;;  %189 = vmatpush.xpose.msra.mxu0 %v141_v17  ;;  %v80_v50 = vld [vmem:[#allocation5 + $0xd8] sm:$0xff]  ;;  %v78_v51 = vld [vmem:[#allocation5 + $0xc8] sm:$0xff]  ;;  %v71_v52 = vld [vmem:[#allocation5 + $0x90] sm:$0xff] }
  0x1d   :  { %249 = vmatpush.xpose.msra.mxu3 %v144_v18  ;;  %209 = vmatpush.xpose.msra.mxu1 %v142_v19  ;;  %v69_v53 = vld [vmem:[#allocation5 + $0x80] sm:$0xff]  ;;  %v72_v54 = vld [vmem:[#allocation5 + $0x98] sm:$0xff]  ;;  %v70_v55 = vld [vmem:[#allocation5 + $0x88] sm:$0xff] }
  0x1e   :  { %v63_v56 = vld [vmem:[#allocation5 + $0x50] sm:$0xff]  ;;  %v61_v57 = vld [vmem:[#allocation5 + $0x40] sm:$0xff]  ;;  %v64_v58 = vld [vmem:[#allocation5 + $0x58] sm:$0xff] }
  0x1f   :  { %v62_v59 = vld [vmem:[#allocation5 + $0x48] sm:$0xff]  ;;  %v55_v60 = vld [vmem:[#allocation5 + $0x10] sm:$0xff]  ;;  %v53_v61 = vld [vmem:[#allocation5] sm:$0xff] }
  0x20   :  { %230 = vmatpush.xpose.msra.mxu2 %v135_v20  ;;  %190 = vmatpush.xpose.msra.mxu0 %v133_v21  ;;  %v179_v62 = vld [vmem:[#allocation5 + $0x3f0] sm:$0xff]  ;;  %v56_v63 = vld [vmem:[#allocation5 + $0x18] sm:$0xff]  ;;  %v177_v0 = vld [vmem:[#allocation5 + $0x3e0] sm:$0xff] }
  0x21   :  { %250 = vmatpush.xpose.msra.mxu3 %v136_v22  ;;  %210 = vmatpush.xpose.msra.mxu1 %v134_v23  ;;  %v180_v1 = vld [vmem:[#allocation5 + $0x3f8] sm:$0xff]  ;;  %v54_v2 = vld [vmem:[#allocation5 + $0x8] sm:$0xff]  ;;  %v171_v4 = vld [vmem:[#allocation5 + $0x3b0] sm:$0xff] }
  0x22   :  { %v178_v3 = vld [vmem:[#allocation5 + $0x3e8] sm:$0xff]  ;;  %v169_v5 = vld [vmem:[#allocation5 + $0x3a0] sm:$0xff]  ;;  %v172_v6 = vld [vmem:[#allocation5 + $0x3b8] sm:$0xff] }
  0x23   :  { %v170_v7 = vld [vmem:[#allocation5 + $0x3a8] sm:$0xff]  ;;  %v163_v8 = vld [vmem:[#allocation5 + $0x370] sm:$0xff]  ;;  %v161_v9 = vld [vmem:[#allocation5 + $0x360] sm:$0xff] }
  0x24   :  { %231 = vmatpush.xpose.msra.mxu2 %v127_v24  ;;  %191 = vmatpush.xpose.msra.mxu0 %v125_v25  ;;  %v164_v10 = vld [vmem:[#allocation5 + $0x378] sm:$0xff]  ;;  %v162_v11 = vld [vmem:[#allocation5 + $0x368] sm:$0xff]  ;;  %v155_v12 = vld [vmem:[#allocation5 + $0x330] sm:$0xff] }
  0x25   :  { %251 = vmatpush.xpose.msra.mxu3 %v128_v26  ;;  %211 = vmatpush.xpose.msra.mxu1 %v126_v27  ;;  %v153_v13 = vld [vmem:[#allocation5 + $0x320] sm:$0xff]  ;;  %v156_v14 = vld [vmem:[#allocation5 + $0x338] sm:$0xff]  ;;  %v154_v15 = vld [vmem:[#allocation5 + $0x328] sm:$0xff] }
  0x26   :  { %v147_v16 = vld [vmem:[#allocation5 + $0x2f0] sm:$0xff]  ;;  %v145_v17 = vld [vmem:[#allocation5 + $0x2e0] sm:$0xff]  ;;  %v148_v18 = vld [vmem:[#allocation5 + $0x2f8] sm:$0xff] }
  0x27   :  { %v146_v19 = vld [vmem:[#allocation5 + $0x2e8] sm:$0xff]  ;;  %v139_v20 = vld [vmem:[#allocation5 + $0x2b0] sm:$0xff]  ;;  %v137_v21 = vld [vmem:[#allocation5 + $0x2a0] sm:$0xff] }
  0x28   :  { %232 = vmatpush.xpose.msra.mxu2 %v119_v28  ;;  %192 = vmatpush.xpose.msra.mxu0 %v117_v29  ;;  %v140_v22 = vld [vmem:[#allocation5 + $0x2b8] sm:$0xff]  ;;  %v138_v23 = vld [vmem:[#allocation5 + $0x2a8] sm:$0xff]  ;;  %v131_v24 = vld [vmem:[#allocation5 + $0x270] sm:$0xff] }
  0x29   :  { %252 = vmatpush.xpose.msra.mxu3 %v120_v30  ;;  %212 = vmatpush.xpose.msra.mxu1 %v118_v31  ;;  %v47_v25 = vld [vmem:[#allocation2 + $0x10] sm:$0xff]  ;;  %v129_v26 = vld [vmem:[#allocation5 + $0x260] sm:$0xff]  ;;  %v132_v27 = vld [vmem:[#allocation5 + $0x278] sm:$0xff] }
  0x2a   :  { %v130_v28 = vld [vmem:[#allocation5 + $0x268] sm:$0xff]  ;;  %v45_v29 = vld [vmem:[#allocation2] sm:$0xff]  ;;  %v48_v30 = vld [vmem:[#allocation2 + $0x18] sm:$0xff] }
  0x2b   :  { %v123_v31 = vld [vmem:[#allocation5 + $0x230] sm:$0xff] }
  0x2c   :  { %233 = vmatpush.xpose.msra.mxu2 %v111_v32  ;;  %193 = vmatpush.xpose.msra.mxu0 %v109_v33  ;;  %v46_v32 = vld [vmem:[#allocation2 + $0x8] sm:$0xff]  ;;  %v121_v33 = vld [vmem:[#allocation5 + $0x220] sm:$0xff] }
  0x2d   :  { %253 = vmatpush.xpose.msra.mxu3 %v112_v34  ;;  %213 = vmatpush.xpose.msra.mxu1 %v110_v35  ;;  %v124_v34 = vld [vmem:[#allocation5 + $0x238] sm:$0xff]  ;;  %v122_v35 = vld [vmem:[#allocation5 + $0x228] sm:$0xff] }
  0x30   :  { %234 = vmatpush.xpose.msra.mxu2 %v103_v36  ;;  %194 = vmatpush.xpose.msra.mxu0 %v101_v37  ;;  %v115_v36 = vld [vmem:[#allocation5 + $0x1f0] sm:$0xff]  ;;  %v113_v37 = vld [vmem:[#allocation5 + $0x1e0] sm:$0xff] }
  0x31   :  { %254 = vmatpush.xpose.msra.mxu3 %v104_v38  ;;  %214 = vmatpush.xpose.msra.mxu1 %v102_v39  ;;  %v116_v38 = vld [vmem:[#allocation5 + $0x1f8] sm:$0xff]  ;;  %v114_v39 = vld [vmem:[#allocation5 + $0x1e8] sm:$0xff] }
  0x34   :  { %235 = vmatpush.xpose.msra.mxu2 %v95_v40  ;;  %195 = vmatpush.xpose.msra.mxu0 %v93_v41  ;;  %v107_v40 = vld [vmem:[#allocation5 + $0x1b0] sm:$0xff]  ;;  %v105_v41 = vld [vmem:[#allocation5 + $0x1a0] sm:$0xff] }
  0x35   :  { %255 = vmatpush.xpose.msra.mxu3 %v96_v42  ;;  %215 = vmatpush.xpose.msra.mxu1 %v94_v43  ;;  %v108_v42 = vld [vmem:[#allocation5 + $0x1b8] sm:$0xff]  ;;  %v106_v43 = vld [vmem:[#allocation5 + $0x1a8] sm:$0xff] }
  0x38   :  { %236 = vmatpush.xpose.msra.mxu2 %v87_v44  ;;  %196 = vmatpush.xpose.msra.mxu0 %v85_v45  ;;  %v99_v44 = vld [vmem:[#allocation5 + $0x170] sm:$0xff]  ;;  %v97_v45 = vld [vmem:[#allocation5 + $0x160] sm:$0xff] }
  0x39   :  { %256 = vmatpush.xpose.msra.mxu3 %v88_v46  ;;  %216 = vmatpush.xpose.msra.mxu1 %v86_v47  ;;  %v100_v46 = vld [vmem:[#allocation5 + $0x178] sm:$0xff]  ;;  %v98_v47 = vld [vmem:[#allocation5 + $0x168] sm:$0xff] }
  0x3c   :  { %237 = vmatpush.xpose.msra.mxu2 %v79_v48  ;;  %197 = vmatpush.xpose.msra.mxu0 %v77_v49  ;;  %v91_v48 = vld [vmem:[#allocation5 + $0x130] sm:$0xff]  ;;  %v89_v49 = vld [vmem:[#allocation5 + $0x120] sm:$0xff] }
  0x3d   :  { %257 = vmatpush.xpose.msra.mxu3 %v80_v50  ;;  %217 = vmatpush.xpose.msra.mxu1 %v78_v51  ;;  %v92_v50 = vld [vmem:[#allocation5 + $0x138] sm:$0xff]  ;;  %v90_v51 = vld [vmem:[#allocation5 + $0x128] sm:$0xff] }
  0x40   :  { %238 = vmatpush.xpose.msra.mxu2 %v71_v52  ;;  %198 = vmatpush.xpose.msra.mxu0 %v69_v53  ;;  %v83_v52 = vld [vmem:[#allocation5 + $0xf0] sm:$0xff]  ;;  %v81_v53 = vld [vmem:[#allocation5 + $0xe0] sm:$0xff] }
  0x41   :  { %258 = vmatpush.xpose.msra.mxu3 %v72_v54  ;;  %218 = vmatpush.xpose.msra.mxu1 %v70_v55  ;;  %v84_v54 = vld [vmem:[#allocation5 + $0xf8] sm:$0xff]  ;;  %v82_v55 = vld [vmem:[#allocation5 + $0xe8] sm:$0xff] }
  0x44   :  { %239 = vmatpush.xpose.msra.mxu2 %v63_v56  ;;  %199 = vmatpush.xpose.msra.mxu0 %v61_v57  ;;  %v75_v56 = vld [vmem:[#allocation5 + $0xb0] sm:$0xff]  ;;  %v73_v57 = vld [vmem:[#allocation5 + $0xa0] sm:$0xff] }
  0x45   :  { %259 = vmatpush.xpose.msra.mxu3 %v64_v58  ;;  %219 = vmatpush.xpose.msra.mxu1 %v62_v59  ;;  %v76_v58 = vld [vmem:[#allocation5 + $0xb8] sm:$0xff]  ;;  %v74_v59 = vld [vmem:[#allocation5 + $0xa8] sm:$0xff] }
  0x48   :  { %240 = vmatpush.xpose.msra.mxu2 %v55_v60  ;;  %200 = vmatpush.xpose.msra.mxu0 %v53_v61  ;;  %v67_v60 = vld [vmem:[#allocation5 + $0x70] sm:$0xff]  ;;  %v65_v61 = vld [vmem:[#allocation5 + $0x60] sm:$0xff] }
  0x49   :  { %260 = vmatpush.xpose.msra.mxu3 %v56_v63  ;;  %220 = vmatpush.xpose.msra.mxu1 %v54_v2  ;;  %v66_v63 = vld [vmem:[#allocation5 + $0x68] sm:$0xff]  ;;  %v60_v2 = vld [vmem:[#allocation5 + $0x38] sm:$0xff] }
  0x4b   :  { %241 = vmatmul.f32.vlgmr.msra.gmra.mxu2 %v47_v25  ;;  %201 = vmatmul.f32.vlgmr.msra.gmra.mxu0 %v45_v29 }
  0x4c   :  { %305 = vmatpush.xpose.msrb.mxu2 %v179_v62  ;;  %265 = vmatpush.xpose.msrb.mxu0 %v177_v0  ;;  %v68_v62 = vld [vmem:[#allocation5 + $0x78] sm:$0xff]  ;;  %v59_v0 = vld [vmem:[#allocation5 + $0x30] sm:$0xff] }
  0x4d   :  { %325 = vmatpush.xpose.msrb.mxu3 %v180_v1  ;;  %285 = vmatpush.xpose.msrb.mxu1 %v178_v3  ;;  %v57_v1 = vld [vmem:[#allocation5 + $0x20] sm:$0xff]  ;;  %v51_v3 = vld [vmem:[#allocation2 + $0x30] sm:$0xff] }
  0x4e   :  { %261 = vmatmul.f32.vlgmr.msra.gmra.mxu3 %v48_v30  ;;  %221 = vmatmul.f32.vlgmr.msra.gmra.mxu1 %v46_v32 }
  0x50   :  { %306 = vmatpush.xpose.msrb.mxu2 %v171_v4  ;;  %266 = vmatpush.xpose.msrb.mxu0 %v169_v5  ;;  %v58_v4 = vld [vmem:[#allocation5 + $0x28] sm:$0xff]  ;;  %v49_v5 = vld [vmem:[#allocation2 + $0x20] sm:$0xff] }
  0x51   :  { %326 = vmatpush.xpose.msrb.mxu3 %v172_v6  ;;  %286 = vmatpush.xpose.msrb.mxu1 %v170_v7  ;;  %v52_v6 = vld [vmem:[#allocation2 + $0x38] sm:$0xff]  ;;  %v50_v7 = vld [vmem:[#allocation2 + $0x28] sm:$0xff] }
  0x54   :  { %307 = vmatpush.xpose.msrb.mxu2 %v163_v8  ;;  %267 = vmatpush.xpose.msrb.mxu0 %v161_v9  ;;  %v369_v8 = vld [vmem:[%s487_s2] ss:$0 sm:$0xff] }
  0x55   :  { %327 = vmatpush.xpose.msrb.mxu3 %v164_v10  ;;  %287 = vmatpush.xpose.msrb.mxu1 %v162_v11 }
  0x58   :  { %308 = vmatpush.xpose.msrb.mxu2 %v155_v12  ;;  %268 = vmatpush.xpose.msrb.mxu0 %v153_v13 }
  0x59   :  { %328 = vmatpush.xpose.msrb.mxu3 %v156_v14  ;;  %288 = vmatpush.xpose.msrb.mxu1 %v154_v15 }
  0x5c   :  { %309 = vmatpush.xpose.msrb.mxu2 %v147_v16  ;;  %269 = vmatpush.xpose.msrb.mxu0 %v145_v17 }
  0x5d   :  { %329 = vmatpush.xpose.msrb.mxu3 %v148_v18  ;;  %289 = vmatpush.xpose.msrb.mxu1 %v146_v19 }
  0x60   :  { %310 = vmatpush.xpose.msrb.mxu2 %v139_v20  ;;  %270 = vmatpush.xpose.msrb.mxu0 %v137_v21 }
  0x61   :  { %330 = vmatpush.xpose.msrb.mxu3 %v140_v22  ;;  %290 = vmatpush.xpose.msrb.mxu1 %v138_v23 }
  0x64   :  { %311 = vmatpush.xpose.msrb.mxu2 %v131_v24  ;;  %271 = vmatpush.xpose.msrb.mxu0 %v129_v26 }
  0x65   :  { %331 = vmatpush.xpose.msrb.mxu3 %v132_v27  ;;  %291 = vmatpush.xpose.msrb.mxu1 %v130_v28 }
  0x68   :  { %312 = vmatpush.xpose.msrb.mxu2 %v123_v31  ;;  %272 = vmatpush.xpose.msrb.mxu0 %v121_v33 }
  0x69   :  { %332 = vmatpush.xpose.msrb.mxu3 %v124_v34  ;;  %292 = vmatpush.xpose.msrb.mxu1 %v122_v35 }
  0x6c   :  { %313 = vmatpush.xpose.msrb.mxu2 %v115_v36  ;;  %273 = vmatpush.xpose.msrb.mxu0 %v113_v37 }
  0x6d   :  { %333 = vmatpush.xpose.msrb.mxu3 %v116_v38  ;;  %293 = vmatpush.xpose.msrb.mxu1 %v114_v39 }
  0x70   :  { %314 = vmatpush.xpose.msrb.mxu2 %v107_v40  ;;  %274 = vmatpush.xpose.msrb.mxu0 %v105_v41 }
  0x71   :  { %334 = vmatpush.xpose.msrb.mxu3 %v108_v42  ;;  %294 = vmatpush.xpose.msrb.mxu1 %v106_v43 }
  0x74   :  { %315 = vmatpush.xpose.msrb.mxu2 %v99_v44  ;;  %275 = vmatpush.xpose.msrb.mxu0 %v97_v45 }
  0x75   :  { %335 = vmatpush.xpose.msrb.mxu3 %v100_v46  ;;  %295 = vmatpush.xpose.msrb.mxu1 %v98_v47 }
  0x78   :  { %316 = vmatpush.xpose.msrb.mxu2 %v91_v48  ;;  %276 = vmatpush.xpose.msrb.mxu0 %v89_v49 }
  0x79   :  { %336 = vmatpush.xpose.msrb.mxu3 %v92_v50  ;;  %296 = vmatpush.xpose.msrb.mxu1 %v90_v51 }
  0x7c   :  { %317 = vmatpush.xpose.msrb.mxu2 %v83_v52  ;;  %277 = vmatpush.xpose.msrb.mxu0 %v81_v53 }
  0x7d   :  { %337 = vmatpush.xpose.msrb.mxu3 %v84_v54  ;;  %297 = vmatpush.xpose.msrb.mxu1 %v82_v55 }
  0x80   :  { %318 = vmatpush.xpose.msrb.mxu2 %v75_v56  ;;  %278 = vmatpush.xpose.msrb.mxu0 %v73_v57 }
  0x81   :  { %338 = vmatpush.xpose.msrb.mxu3 %v76_v58  ;;  %298 = vmatpush.xpose.msrb.mxu1 %v74_v59 }
  0x84   :  { %319 = vmatpush.xpose.msrb.mxu2 %v67_v60  ;;  %279 = vmatpush.xpose.msrb.mxu0 %v65_v61 }
  0x85   :  { %339 = vmatpush.xpose.msrb.mxu3 %v68_v62  ;;  %299 = vmatpush.xpose.msrb.mxu1 %v66_v63 }
  0x88   :  { %320 = vmatpush.xpose.msrb.mxu2 %v59_v0  ;;  %280 = vmatpush.xpose.msrb.mxu0 %v57_v1 }
  0x89   :  { %340 = vmatpush.xpose.msrb.mxu3 %v60_v2  ;;  %300 = vmatpush.xpose.msrb.mxu1 %v58_v4 }
  0x8b   :  { %321 = vmatmul.f32.vlgmr.msrb.gmra.mxu2 %v51_v3  ;;  %281 = vmatmul.f32.vlgmr.msrb.gmra.mxu0 %v49_v5 }
  0x8c   :  { %341 = vmatmul.f32.vlgmr.msrb.gmra.mxu3 %v52_v6  ;;  %301 = vmatmul.f32.vlgmr.msrb.gmra.mxu1 %v50_v7 }
  0xc8   :  { %v202_v9 = vpop.f32.mrf.mxu0 }
  0xc9   :  { %v203_v10 = vadd.f32 %v369_v8, %v202_v9 }
  0xcb   :  { %v222_v11 = vpop.f32.mrf.mxu1 }
  0xcc   :  { %v223_v12 = vadd.f32 %v222_v11, %v203_v10 }
  0xce   :  { %v242_v13 = vpop.f32.mrf.mxu2 }
  0xcf   :  { %v243_v14 = vadd.f32 %v242_v13, %v223_v12 }
  0xd1   :  { %v262_v15 = vpop.f32.mrf.mxu3 }
  0xd2   :  { %v263_v16 = vadd.f32 %v262_v15, %v243_v14 }
 0x108   :  { %v282_v17 = vpop.f32.mrf.mxu0 }
 0x109   :  { %v283_v18 = vadd.f32 %v282_v17, %v263_v16  ;;  %v302_v19 = vpop.f32.mrf.mxu1 }
 0x10b   :  { %v303_v20 = vadd.f32 %v302_v19, %v283_v18 }
 0x10e   :  { %v322_v21 = vpop.f32.mrf.mxu2 }
 0x10f   :  { %v323_v22 = vadd.f32 %v322_v21, %v303_v20  ;;  %v342_v23 = vpop.f32.mrf.mxu3 }
 0x111   :  { %v343_v24 = vadd.f32 %v342_v23, %v323_v22 }
 0x113   :  { %345 = vst [vmem:[#allocation7] sm:$0xff] %v343_v24 }
 0x114   :  { %356 = dma.vmem_to_hbm [thread:$0]  %s352_s25, 128, %s354_s28, [#allocation4]  }
 0x115   :  { %446 = dma.done.wait [#allocation4], 128  }
 0x116   :  { %447 = vsyncadd [#allocation4], 4294967168 }
 0x117   :  { %361 = vsyncpa [#allocation3], 1 }
 0x118   :  { %362 = vsyncpa [#allocation6], 1 }
 0x119   :  { %363 = vsyncpa [#allocation4], 1 }

</bundles_post_ra>
